<compile_context>
chip_gen: v6e
topology: v6e:2x2x1
jax: 0.10.0
libtpu: 0.0.40
codegen_flags: <defaults>
</compile_context>

<pallas_src>
import functools

import jax
import jax.numpy as jnp
from jax.experimental import pallas as pl
from jax.experimental.pallas import tpu as pltpu


# ----------------------------------------------------------------------------
# pltpu.roll direction probe (run once, outside jit)
# ----------------------------------------------------------------------------
_ROLL_SIGN = None


def _roll_shift_sign():
    """Resolve the pltpu.roll shift convention once at runtime.

    The fused kernel needs the lane gather out[p] = in[p + d].  If pltpu.roll
    matches jnp.roll (out[i] = in[i - shift]) the required shift is -d,
    otherwise +d.  A 1-vreg probe kernel pins the convention so the ADB kernel
    is correct regardless of jax/Mosaic version.  (For AOT / CPU-only builds,
    pin the sign explicitly instead of running the probe.)
    """
    global _ROLL_SIGN
    if _ROLL_SIGN is None:
        def probe(x_ref, o_ref):
            o_ref[...] = pltpu.roll(x_ref[...], 1, axis=1)

        x = jnp.tile(jnp.arange(128, dtype=jnp.float32), (8, 1))
        y = pl.pallas_call(
            probe, out_shape=jax.ShapeDtypeStruct((8, 128), jnp.float32))(x)
        first = float(y[0, 0])
        if first == 127.0:       # jnp.roll convention: out[i] = in[i - shift]
            _ROLL_SIGN = -1
        elif first == 1.0:       # opposite convention: out[i] = in[i + shift]
            _ROLL_SIGN = 1
        else:
            raise RuntimeError(f"unexpected pltpu.roll behaviour: {first}")
    return _ROLL_SIGN


# ----------------------------------------------------------------------------
# Fused ADB kernel (block_batch images per grid step, everything in VMEM)
# ----------------------------------------------------------------------------
def _adb_kernel(*refs, H, W, C, Bt, shift_sign):
    """refs = (x_ref, <flat weights, see prepare_kernel_args>, out_ref).

    Feature maps are (channels, Bt*H*W): channels on sublanes, (image, pixel)
    on lanes.
    """
    x_ref = refs[0]
    out_ref = refs[-1]
    params = refs[1:-1]

    HW = H * W
    N = Bt * HW                          # lane extent per grid step
    f32 = jnp.float32
    bf16 = jnp.bfloat16

    # ---- parse the flat parameter list (mirrors prepare_kernel_args) -------
    cursor = 0

    def take(n):
        nonlocal cursor
        got = params[cursor:cursor + n]
        cursor += n
        return got

    rdb_params = []
    for _ in range(2):
        convs = []
        for i in range(C):
            wrefs = take(i + 1)          # (9, G, Cin_j) bf16, one per feature group
            (bref,) = take(1)            # (G, 1) f32
            convs.append((wrefs, bref))
        lff_wrefs = take(C + 1)          # (G0, Cin_j) bf16, one per feature group
        (lff_bref,) = take(1)            # (G0, 1) f32
        rdb_params.append((convs, lff_wrefs, lff_bref))
    (ca_w1d_ref,) = take(1)              # (G0, 2*hid) f32  == [W1^T | W1^T]
    (ca_w2d_ref,) = take(1)              # (G0, 2*hid) f32  == [W2   | W2  ]
    (pa_w_ref,) = take(1)                # (49, 2, 1) f32, tap-major 7x7 weights
    assert cursor == len(params)

    # ---- per-image pixel coordinates on the lane axis ------------------------
    pos = jax.lax.broadcasted_iota(jnp.int32, (1, N), 1)
    img = pos // HW                      # image index of each lane
    pin = pos % HW                       # pixel index within its image
    py = pin // W
    px = pin % W

    _mask_cache = {}

    def valid_mask(dy, dx):
        key = (dy, dx)
        if key not in _mask_cache:
            _mask_cache[key] = ((py + dy >= 0) & (py + dy < H) &
                                (px + dx >= 0) & (px + dx < W))
        return _mask_cache[key]

    def lane_shift(a, d):
        """a[:, p] -> a[:, p + d]; wrapped / cross-image lanes are masked by caller."""
        if d == 0:
            return a
        return pltpu.roll(a, (shift_sign * d) % a.shape[1], axis=1)

    def tap(a, dy, dx):
        """Zero-padded shifted copy of a feature map: the (dy, dx) conv tap."""
        return jnp.where(valid_mask(dy, dx), lane_shift(a, dy * W + dx), 0.0)

    def taps3x3(a):
        """The 9 masked taps of one feature group, pre-cast for the MXU."""
        return [tap(a, kh - 1, kw - 1).astype(bf16)
                for kh in range(3) for kw in range(3)]

    # ---- RDB: per-tap accumulated dots, no im2col / LFF concatenation --------
    def rdb(feat, convs, lff_wrefs, lff_bref):
        groups = [feat]                  # [x, y_1, ..., y_C] feature groups (f32)
        taps = [taps3x3(feat)]           # per-group tap lists (bf16), reused
        for i, (wrefs, bref) in enumerate(convs):
            acc = jnp.zeros((bref.shape[0], N), f32)
            for wref, tps in zip(wrefs, taps):
                for t in range(9):       # 9 small dots per group, f32 accumulation
                    acc = acc + jnp.dot(wref[t], tps[t],
                                        preferred_element_type=f32)
            y = jnp.maximum(acc + bref[...], 0.0)
            groups.append(y)
            if i + 1 < C:                # last group only feeds the 1x1 LFF
                taps.append(taps3x3(y))
        lff = jnp.zeros((feat.shape[0], N), f32)
        for lref, g in zip(lff_wrefs, groups):
            lff = lff + jnp.dot(lref[...], g.astype(bf16),
                                preferred_element_type=f32)
        return lff + lff_bref[...] + feat

    # ---- CPA: fused channel attention + position attention -------------------
    def cpa(feat):
        w1d = ca_w1d_ref[...]            # (G0, 2*hid)
        w2d = ca_w2d_ref[...]            # (G0, 2*hid)
        two_hid = w1d.shape[1]
        hid = two_hid // 2
        lane_h = jax.lax.broadcasted_iota(jnp.int32, (1, two_hid), 1)

        # Channel attention: per-image global avg/max pool -> shared MLP in one
        # pass (lane-duplicated weights: sum over all 2*hid lanes == MLP(avg)+MLP(max))
        gates = []
        for b in range(Bt):
            slab = feat[:, b * HW:(b + 1) * HW]          # lane-aligned image slab
            avg_c = jnp.mean(slab, axis=1, keepdims=True)
            max_c = jnp.max(slab, axis=1, keepdims=True)
            vsel = jnp.where(lane_h < hid, avg_c, max_c)  # (G0, 2*hid): [avg | max]
            hmlp = jnp.maximum(jnp.sum(w1d * vsel, axis=0, keepdims=True), 0.0)
            pre = jnp.sum(w2d * hmlp, axis=1, keepdims=True)
            gates.append(jax.nn.sigmoid(pre))             # (G0, 1)
        gate_c = gates[-1]
        for b in range(Bt - 2, -1, -1):   # per-image gate -> full lane extent
            gate_c = jnp.where(img == b, gates[b], gate_c)
        ca = feat * gate_c

        # Position attention: stacked (avg; max) channel maps, 49 rolls, per-tap
        # (2, 1) VMEM weight columns, one sublane reduce at the end.
        row2 = jax.lax.broadcasted_iota(jnp.int32, (2, 1), 0)
        s2 = jnp.where(row2 == 0,
                       jnp.mean(ca, axis=0, keepdims=True),
                       jnp.max(ca, axis=0, keepdims=True))    # (2, N)
        acc2 = jnp.zeros((2, N), f32)
        for kh in range(7):
            for kw in range(7):
                acc2 = acc2 + tap(s2, kh - 3, kw - 3) * pa_w_ref[kh * 7 + kw]
        gate_s = jax.nn.sigmoid(jnp.sum(acc2, axis=0, keepdims=True))  # (1, N)
        return ca * gate_s

    xin = x_ref[...].astype(f32)          # (G0, Bt*HW)
    out0 = rdb(xin, *rdb_params[0])
    mid = cpa(out0)
    out1 = rdb(mid, *rdb_params[1])
    out_ref[...] = out1.astype(out_ref.dtype)


# ----------------------------------------------------------------------------
# Public wrapper
# ----------------------------------------------------------------------------
def adb_forward(x_nchw, kernel_args, *, C, block_batch=None):
    """ADB forward.  x_nchw: (B, G0, H, W); kernel_args from prepare_kernel_args."""
    B, G0, H, W = x_nchw.shape
    HW = H * W
    Bt = block_batch if block_batch is not None else min(B, 2)
    assert B % Bt == 0, (B, Bt)
    N = Bt * HW

    # channel-on-sublane / (image, pixel)-on-lane layout: (G0, B*HW)
    x_l = jnp.transpose(x_nchw, (1, 0, 2, 3)).reshape(G0, B * HW)

    kernel = functools.partial(_adb_kernel, H=H, W=W, C=C, Bt=Bt,
                               shift_sign=_roll_shift_sign())

    def resident_spec(a):
        shp = a.shape
        return pl.BlockSpec(shp, lambda b: (0,) * len(shp))

    in_specs = [pl.BlockSpec((G0, N), lambda b: (0, b))]
    in_specs += [resident_spec(a) for a in kernel_args]

    out_l = pl.pallas_call(
        kernel,
        out_shape=jax.ShapeDtypeStruct((G0, B * HW), x_nchw.dtype),
        grid=(B // Bt,),
        in_specs=in_specs,
        out_specs=pl.BlockSpec((G0, N), lambda b: (0, b)),
        compiler_params=pltpu.CompilerParams(
            dimension_semantics=("parallel",),
            vmem_limit_bytes=32 * 1024 * 1024),
    )(x_l, *kernel_args)
    return jnp.transpose(out_l.reshape(G0, B, H, W), (1, 0, 2, 3))


def prepare_kernel_args(tp, C):
    """Flatten PyTorch-layout ADB weights into the kernel argument list.

    3x3 conv weights (Cout, Cin, 3, 3) become per-feature-group, tap-major
    blocks (9, Cout, Cin_group) in bf16 so the kernel can accumulate one dot
    per (tap, group) without any im2col concatenation; the 1x1 LFF is split
    per feature group the same way.  Channel-attention weights are duplicated
    along lanes ([W1^T|W1^T], [W2|W2]) so avg & max share one MLP pass, and
    the 7x7 position-attention weights are laid out (49, 2, 1) so each tap's
    weight column is a cheap leading-axis VMEM load.
    """
    bf16 = jnp.bfloat16
    f32 = jnp.float32
    args = []
    for name in ("rdb_0", "rdb_1"):
        rp = tp[name]
        G0 = rp["conv_w"][0].shape[1]
        G = rp["conv_w"][0].shape[0]
        for i in range(C):
            w = rp["conv_w"][i]                          # (G, G0 + i*G, 3, 3)
            w_t = jnp.transpose(w, (2, 3, 0, 1)).reshape(9, G, w.shape[1])
            start = 0
            for gs in [G0] + [G] * i:                    # split per feature group
                args.append(w_t[:, :, start:start + gs].astype(bf16))
                start += gs
            args.append(rp["conv_b"][i].reshape(-1, 1).astype(f32))
        lw = rp["lff_w"].reshape(rp["lff_w"].shape[0], rp["lff_w"].shape[1])
        start = 0
        for gs in [G0] + [G] * C:                        # split LFF per feature group
            args.append(lw[:, start:start + gs].astype(bf16))
            start += gs
        args.append(rp["lff_b"].reshape(-1, 1).astype(f32))
    # Channel_Attention shared MLP (1x1 convs, no bias), lane-duplicated.
    w1 = tp["ca_w1"].reshape(tp["ca_w1"].shape[0], tp["ca_w1"].shape[1])   # (hid, G0)
    w2 = tp["ca_w2"].reshape(tp["ca_w2"].shape[0], tp["ca_w2"].shape[1])   # (G0, hid)
    w1t = jnp.transpose(w1)                                                # (G0, hid)
    args.append(jnp.concatenate([w1t, w1t], axis=1).astype(f32))           # (G0, 2*hid)
    args.append(jnp.concatenate([w2, w2], axis=1).astype(f32))             # (G0, 2*hid)
    # Position_Attention Conv2d(2,1,7): (49, 2, 1), tap index = kh*7 + kw.
    paw = tp["pa_w"][0]                                                    # (2, 7, 7)
    args.append(jnp.transpose(paw, (1, 2, 0)).reshape(49, 2)[:, :, None].astype(f32))
    return args


# ----------------------------------------------------------------------------
# Deterministic synthetic parameters in the PyTorch nn.Module layout
# ----------------------------------------------------------------------------
def init_torch_params(key, G0=64, C=2, G=8, ratio=16):
    keys = iter(jax.random.split(key, 32))

    def conv_w(k, cout, cin, kh, kw):
        bound = float(1.0 / (cin * kh * kw) ** 0.5)
        return jax.random.uniform(k, (cout, cin, kh, kw), jnp.float32, -bound, bound)

    def conv_b(k, cout, fan_in):
        bound = float(1.0 / fan_in ** 0.5)
        return jax.random.uniform(k, (cout,), jnp.float32, -bound, bound)

    def make_rdb():
        conv_ws, conv_bs = [], []
        for i in range(C):
            cin = G0 + i * G
            conv_ws.append(conv_w(next(keys), G, cin, 3, 3))
            conv_bs.append(conv_b(next(keys), G, cin * 9))
        return {"conv_w": conv_ws, "conv_b": conv_bs,
                "lff_w": conv_w(next(keys), G0, G0 + C * G, 1, 1),
                "lff_b": conv_b(next(keys), G0, G0 + C * G)}

    return {
        "rdb_0": make_rdb(),
        "rdb_1": make_rdb(),
        "ca_w1": conv_w(next(keys), G0 // ratio, G0, 1, 1),   # Conv2d(64,4,1,no bias)
        "ca_w2": conv_w(next(keys), G0, G0 // ratio, 1, 1),   # Conv2d(4,64,1,no bias)
        "pa_w": conv_w(next(keys), 1, 2, 7, 7),               # Conv2d(2,1,7,no bias)
    }


# ----------------------------------------------------------------------------
# Pure-JAX reference (mirrors the PyTorch module) for a correctness self-check
# ----------------------------------------------------------------------------
def _conv_ref(x, w, b=None):
    pad_h, pad_w = w.shape[2] // 2, w.shape[3] // 2
    out = jax.lax.conv_general_dilated(
        x, w, window_strides=(1, 1),
        padding=((pad_h, pad_h), (pad_w, pad_w)),
        dimension_numbers=("NCHW", "OIHW", "NCHW"),
        precision=jax.lax.Precision.HIGHEST)
    if b is not None:
        out = out + b.reshape(1, -1, 1, 1)
    return out


def adb_reference(x, tp, C):
    def rdb(x, rp):
        out = x
        for i in range(C):
            y = jax.nn.relu(_conv_ref(out, rp["conv_w"][i], rp["conv_b"][i]))
            out = jnp.concatenate([out, y], axis=1)
        return _conv_ref(out, rp["lff_w"], rp["lff_b"]) + x

    def cpa(x):
        avg = jnp.mean(x, axis=(2, 3), keepdims=True)
        mx = jnp.max(x, axis=(2, 3), keepdims=True)
        mlp = lambda v: _conv_ref(jax.nn.relu(_conv_ref(v, tp["ca_w1"])), tp["ca_w2"])
        ca = jax.nn.sigmoid(mlp(avg) + mlp(mx)) * x
        a = jnp.mean(ca, axis=1, keepdims=True)
        m = jnp.max(ca, axis=1, keepdims=True)
        gate = jax.nn.sigmoid(_conv_ref(jnp.concatenate([a, m], axis=1), tp["pa_w"]))
        return gate * ca

    return rdb(cpa(rdb(x, tp["rdb_0"])), tp["rdb_1"])


if __name__ == "__main__":
    # Channel_Attention hard-wires in_planes=64, so G0 must be 64.
    B, G0, C, G, H, W = 2, 64, 2, 8, 16, 16

    _roll_shift_sign()                       # resolve roll convention up front

    key = jax.random.PRNGKey(0)
    kx, kp = jax.random.split(key)
    x = jax.random.normal(kx, (B, G0, H, W), jnp.float32)    # NCHW like PyTorch
    torch_params = init_torch_params(kp, G0=G0, C=C, G=G)
    kargs = prepare_kernel_args(torch_params, C)

    fwd = jax.jit(functools.partial(adb_forward, C=C))
    out = jax.block_until_ready(fwd(x, kargs))

    assert out.shape == (B, G0, H, W), out.shape
    assert bool(jnp.all(jnp.isfinite(out)))

    ref = adb_reference(x, torch_params, C)
    err = float(jnp.max(jnp.abs(out - ref)))
    # bf16 matmul operands (f32 accumulation) across two RDBs land around
    # ~1e-2 max abs error vs the f32 HIGHEST reference; 5e-2 gives headroom.
    assert err < 5e-2, f"max abs error vs reference: {err}"

    print("KERNEL_OK")
</pallas_src>

<mosaic_0001>
module attributes {stable_mosaic.version = 11 : i64} {
  func.func @probe(%arg0: memref<8x128xf32, #tpu.memory_space<vmem>>, %arg1: memref<8x128xf32, #tpu.memory_space<vmem>>) attributes {dimension_semantics = [], scalar_prefetch = 0 : i64, scratch_operands = 0 : i64, tpu.core_type = #tpu.core_type<tc>} {
    %c0 = arith.constant 0 : index
    %c0_0 = arith.constant 0 : index
    %0 = vector.load %arg0[%c0, %c0_0] : memref<8x128xf32, #tpu.memory_space<vmem>>, vector<8x128xf32>
    %c1_i32 = arith.constant 1 : i32
    %1 = tpu.dynamic_rotate %0 by %c1_i32 dim 1 : vector<8x128xf32>, i32 -> vector<8x128xf32>
    %c0_1 = arith.constant 0 : index
    %c0_2 = arith.constant 0 : index
    %2 = vector.load %arg1[%c0_1, %c0_2] : memref<8x128xf32, #tpu.memory_space<vmem>>, vector<8x128xf32>
    tpu.vector_store %arg1[%c0_1, %c0_2], %1 {strides = array<i32>} : memref<8x128xf32, #tpu.memory_space<vmem>>, vector<8x128xf32>,
    return
  }
}

</mosaic_0001>

<bundles_post_ra>
// kernel: tpu_custom_call.1
= control target key start
LH: loop header
LB: loop body
LE: loop exit
PB: predicated region body
PF: predicated region fallthrough
CT: control target
= control target key end

     0   :  { %6 = vsyncpa [#allocation3], 0  ;;  %s106_s0 = inlined_call_operand.hbm [shape: f32[8,128], index: 0, kind: input, shape index: {}]   ;;  %s107_s1 = inlined_call_operand.hbm [shape: f32[8,128], index: 1, kind: output, shape index: {}]  }
   0x1   :  { %7 = vsyncpa [#allocation4], 0  ;;  %s87_s6 = smov [#allocation2]  }
   0x2   :  { %s14_s7 = sshll.u32 %s87_s6, 4  ;;  %s15_s7 = int_to_ptr.vmem [resolvable:$true] %s14_s7 }
   0x3   :  { %s51_s8 = scalar_lea.vmem %s15_s7, 128  ;;  %p56_p1 = scmp.lt.s32.totalorder %s15_s7, %s15_s7 }
   0x4   :  { %p52_p0 = scmp.ne.s32.totalorder %s15_s7, %s51_s8  ;;  %p57_p2 = scmp.lt.s32.totalorder %s51_s8, %s51_s8 }
   0x6   :  { %p58_p3 = por %p57_p2, %p56_p1 }
   0x8   :  { %p59_p4 = pnand %p58_p3, %p52_p0 }
   0xa   :  { %62 = shalt.err (!%p59_p4)
}
   0xb   :  { %17 = dma.hbm_to_vmem [thread:$0]  %s106_s0, 128, %s15_s7, [#allocation3]  }
   0xc   :  { %83 = dma.done.wait [#allocation3], 128  }
   0xd   :  { %84 = vsyncadd [#allocation3], 4294967168  ;;  %v21_v0 = vld [vmem:[#allocation2] sm:$0xff]  ;;  %s88_s11 = smov 1   ;;  %s89_s12 = smov [#allocation5]  }
   0xe   :  { %22 = vrot.lane.b32.xlu0 %v21_v0, %s88_s11  ;;  %s31_s13 = sshll.u32 %s89_s12, 4  ;;  %s32_s13 = int_to_ptr.vmem [resolvable:$true] %s31_s13 }
   0xf   :  { %s63_s14 = scalar_lea.vmem %s32_s13, 128  ;;  %p68_p6 = scmp.lt.s32.totalorder %s32_s13, %s32_s13 }
  0x10   :  { %p64_p5 = scmp.ne.s32.totalorder %s32_s13, %s63_s14  ;;  %p69_p7 = scmp.lt.s32.totalorder %s63_s14, %s63_s14 }
  0x12   :  { %p70_p8 = por %p69_p7, %p68_p6 }
  0x14   :  { %p71_p9 = pnand %p70_p8, %p64_p5 }
  0x80   :  { %v23_v1 = vpop.permute.xlu0 %22 }
  0x81   :  { %24 = vst [vmem:[#allocation5] sm:$0xff] %v23_v1 }
  0x82   :  { %74 = shalt.err (!%p71_p9)
}
  0x83   :  { %34 = dma.vmem_to_hbm [thread:$0]  %s32_s13, 128, %s107_s1, [#allocation4]  }
  0x84   :  { %85 = dma.done.wait [#allocation4], 128  }
  0x85   :  { %86 = vsyncadd [#allocation4], 4294967168 }
  0x86   :  { %38 = vsyncpa [#allocation3], 1 }
  0x87   :  { %39 = vsyncpa [#allocation4], 1 }

</bundles_post_ra>
